<compile_context>
chip_gen: v7x
topology: tpu7x:2x2x1
jax: 0.10.0
libtpu: 0.0.40
codegen_flags: <defaults>
</compile_context>

<pallas_src>
import functools
import math

import jax
import jax.numpy as jnp
from jax.experimental import pallas as pl
from jax.experimental.pallas import tpu as pltpu


def _rbf_kernel(d_ref, c_ref, o_ref, *, sqrt_gamma):
    """Elementwise RBF expansion on one tile.

    Works for both orientations:
      (N,bins) path: d_ref (tile, 1),  c_ref (1, bins),  o_ref (tile, bins)
      (bins,N) path: d_ref (1, tile),  c_ref (bins, 1),  o_ref (bins, tile)
    c_ref holds sqrt(gamma)-pre-scaled centers, so
      exp(-gamma*(d-c)^2) == exp(-(sqrt(gamma)*d - c')^2)
    sqrt_gamma is a static Python float (inlined literal, not a captured const).
    """
    d = d_ref[...] * sqrt_gamma          # scale the small distance tile only
    diff = d - c_ref[...]                # broadcast -> full output tile
    o_ref[...] = jnp.exp(-(diff * diff)).astype(o_ref.dtype)


def _round_up(x: int, m: int) -> int:
    return ((x + m - 1) // m) * m


class RBFExpansion:
    """JAX/Pallas port of nfflr RBFExpansion (forward only).

    Note: gamma mirrors the nfflr convention exactly — gamma = 1/lengthscale
    when lengthscale is None (default), but 1/lengthscale**2 when provided.
    """

    def __init__(self, vmin: float = 0.0, vmax: float = 8.0, bins: int = 40,
                 lengthscale=None, out_dtype=jnp.float32):
        self.vmin = float(vmin)
        self.vmax = float(vmax)
        self.bins = int(bins)
        self.out_dtype = out_dtype
        # buffer: centers = linspace(vmin, vmax, bins)
        self.centers = jnp.linspace(self.vmin, self.vmax, self.bins,
                                    dtype=jnp.float32)
        if lengthscale is None:
            # np.diff(centers).mean() == (vmax - vmin) / (bins - 1)
            self.lengthscale = (self.vmax - self.vmin) / (self.bins - 1)
            self.gamma = 1.0 / self.lengthscale
        else:
            self.lengthscale = float(lengthscale)
            self.gamma = 1.0 / (self.lengthscale ** 2)
        # Bake sqrt(gamma) as a static float and pre-scale the centers so the
        # kernel needs no gamma constant at all.
        self._sqrt_gamma = float(math.sqrt(self.gamma))
        self._scaled_centers = (self.centers * self._sqrt_gamma).astype(jnp.float32)

    def __call__(self, distance: jax.Array, *, tile_n: int = 2048,
                 transposed: bool = False, use_pallas: bool = True) -> jax.Array:
        """RBF-expand distances.

        distance: (N,) float array.
        Returns (N, bins) by default (matches the PyTorch forward).
        transposed=True returns the lane-dense (bins, N) layout (== out.T);
        prefer it when the consumer can take that orientation — it avoids
        masked 40-lane stores and is the fast path on all TPU generations.
        tile_n: rows of output per grid step (rounded to a multiple of 128 and
        clamped to N). 1024-8192 is the sweet spot for large N.
        use_pallas=False falls back to pure jnp (better for tiny N where
        pallas_call launch overhead dominates).
        """
        distance = jnp.asarray(distance, jnp.float32)
        n = distance.shape[0]

        if not use_pallas or n == 0:
            out = jnp.exp(-self.gamma *
                          (distance[:, None] - self.centers[None, :]) ** 2
                          ).astype(self.out_dtype)
            return out.T if transposed else out

        # Lane/sublane-friendly tile: multiple of 128, no bigger than needed.
        tile = max(128, _round_up(min(int(tile_n), _round_up(n, 128)), 128))
        n_pad = _round_up(n, tile)
        d = distance if n_pad == n else jnp.pad(distance, (0, n_pad - n))
        grid = (n_pad // tile,)

        kernel = functools.partial(_rbf_kernel, sqrt_gamma=self._sqrt_gamma)
        cparams = pltpu.CompilerParams(dimension_semantics=("parallel",))

        if transposed:
            # Lane-dense output: N on the lane axis, bins on the sublane axis.
            d2 = d.reshape(1, n_pad)                              # (1, N)
            c2 = self._scaled_centers.reshape(self.bins, 1)       # (bins, 1)
            out = pl.pallas_call(
                kernel,
                out_shape=jax.ShapeDtypeStruct((self.bins, n_pad), self.out_dtype),
                grid=grid,
                in_specs=[
                    pl.BlockSpec((1, tile), lambda i: (0, i)),          # distances
                    pl.BlockSpec((self.bins, 1), lambda i: (0, 0)),     # centers (resident)
                ],
                out_specs=pl.BlockSpec((self.bins, tile), lambda i: (0, i)),
                compiler_params=cparams,
            )(d2, c2)
            return out[:, :n] if n_pad != n else out

        # PyTorch-orientation output (N, bins); bins=40 < 128 lanes, so stores
        # are masked — correct, just not the peak-bandwidth layout.
        d2 = d.reshape(n_pad, 1)                                  # (N, 1)
        c2 = self._scaled_centers.reshape(1, self.bins)           # (1, bins)
        out = pl.pallas_call(
            kernel,
            out_shape=jax.ShapeDtypeStruct((n_pad, self.bins), self.out_dtype),
            grid=grid,
            in_specs=[
                pl.BlockSpec((tile, 1), lambda i: (i, 0)),              # distances
                pl.BlockSpec((1, self.bins), lambda i: (0, 0)),         # centers (resident)
            ],
            out_specs=pl.BlockSpec((tile, self.bins), lambda i: (i, 0)),
            compiler_params=cparams,
        )(d2, c2)
        return out[:n] if n_pad != n else out


def _reference(distance, centers, gamma):
    # pure-JAX reference matching the PyTorch forward
    return jnp.exp(-gamma * (distance[:, None] - centers[None, :]) ** 2)


if __name__ == "__main__":
    key = jax.random.PRNGKey(0)
    rbf = RBFExpansion(vmin=0.0, vmax=8.0, bins=40, lengthscale=None)

    # Small demo: N interatomic distances.
    N = 384
    distance = jax.random.uniform(key, (N,), dtype=jnp.float32,
                                  minval=0.0, maxval=8.0)
    ref = _reference(distance, rbf.centers, rbf.gamma)

    # Default path: exact PyTorch orientation (N, bins).
    out = jax.block_until_ready(rbf(distance))
    assert out.shape == (N, 40)
    assert jnp.allclose(out, ref, atol=1e-5, rtol=1e-4)

    # Lane-dense transposed path: (bins, N) == ref.T.
    out_t = jax.block_until_ready(rbf(distance, transposed=True))
    assert out_t.shape == (40, N)
    assert jnp.allclose(out_t.T, ref, atol=1e-5, rtol=1e-4)

    # Ragged N (not a multiple of 128) + small explicit tile -> multi-step grid.
    N2 = 200
    d2 = jax.random.uniform(jax.random.PRNGKey(1), (N2,), dtype=jnp.float32,
                            minval=0.0, maxval=8.0)
    ref2 = _reference(d2, rbf.centers, rbf.gamma)
    out2 = jax.block_until_ready(rbf(d2, tile_n=128, transposed=True))
    assert out2.shape == (40, N2)
    assert jnp.allclose(out2.T, ref2, atol=1e-5, rtol=1e-4)

    # Explicit-lengthscale branch (gamma = 1/lengthscale**2).
    rbf_l = RBFExpansion(lengthscale=0.5)
    out3 = jax.block_until_ready(rbf_l(d2))
    ref3 = _reference(d2, rbf_l.centers, rbf_l.gamma)
    assert jnp.allclose(out3, ref3, atol=1e-5, rtol=1e-4)

    # Optional bf16-output path (f32 compute, cast at store) for v6e/v7x.
    rbf_bf16 = RBFExpansion(out_dtype=jnp.bfloat16)
    out4 = jax.block_until_ready(rbf_bf16(distance, transposed=True))
    assert out4.dtype == jnp.bfloat16
    assert jnp.allclose(out4.T.astype(jnp.float32), ref, atol=2e-2, rtol=2e-2)

    print("KERNEL_OK")
</pallas_src>

<mosaic_0001>
module attributes {stable_mosaic.version = 11 : i64} {
  func.func @_rbf_kernel(%arg0: i32, %arg1: memref<384x1xf32, #tpu.memory_space<vmem>>, %arg2: memref<1x40xf32, #tpu.memory_space<vmem>>, %arg3: memref<384x40xf32, #tpu.memory_space<vmem>>) attributes {dimension_semantics = [#tpu.dimension_semantics<parallel>], iteration_bounds = array<i64: 1>, scalar_prefetch = 0 : i64, scratch_operands = 0 : i64, tpu.core_type = #tpu.core_type<tc>, window_params = [{transform_indices = @transform_0, window_bounds = array<i64: 384, 1>}, {pipeline_mode = #tpu.pipeline_mode<synchronous>, transform_indices = @transform_1, window_bounds = array<i64: 1, 40>}, {transform_indices = @transform_2, window_bounds = array<i64: 384, 40>}]} {
    %c0 = arith.constant 0 : index
    %c0_0 = arith.constant 0 : index
    %0 = vector.load %arg1[%c0, %c0_0] : memref<384x1xf32, #tpu.memory_space<vmem>>, vector<384x1xf32>
    %cst = arith.constant 2.207940e+00 : f32
    %1 = vector.broadcast %cst : f32 to vector<384x1xf32>
    %2 = arith.mulf %0, %1 : vector<384x1xf32>
    %c0_1 = arith.constant 0 : index
    %c0_2 = arith.constant 0 : index
    %3 = vector.load %arg2[%c0_1, %c0_2] : memref<1x40xf32, #tpu.memory_space<vmem>>, vector<1x40xf32>
    %4 = vector.broadcast %2 : vector<384x1xf32> to vector<384x40xf32>
    %5 = vector.broadcast %3 : vector<1x40xf32> to vector<384x40xf32>
    %6 = arith.subf %4, %5 : vector<384x40xf32>
    %7 = arith.mulf %6, %6 : vector<384x40xf32>
    %cst_3 = arith.constant 0.000000e+00 : f32
    %8 = vector.broadcast %cst_3 : f32 to vector<384x40xf32>
    %9 = arith.subf %8, %7 : vector<384x40xf32>
    %10 = math.exp %9 : vector<384x40xf32>
    %c0_4 = arith.constant 0 : index
    %c0_5 = arith.constant 0 : index
    %11 = vector.load %arg3[%c0_4, %c0_5] : memref<384x40xf32, #tpu.memory_space<vmem>>, vector<384x40xf32>
    tpu.vector_store %arg3[%c0_4, %c0_5], %10 {strides = array<i32>} : memref<384x40xf32, #tpu.memory_space<vmem>>, vector<384x40xf32>,
    return
  }
  func.func @transform_0(%arg0: i32) -> (i32, i32) {
    %c0_i32 = arith.constant 0 : i32
    %c0_i32_0 = arith.constant 0 : i32
    return %arg0, %c0_i32 : i32, i32
  }
  func.func @transform_1(%arg0: i32) -> (i32, i32) {
    %c0_i32 = arith.constant 0 : i32
    %c0_i32_0 = arith.constant 0 : i32
    %c0_i32_1 = arith.constant 0 : i32
    return %c0_i32, %c0_i32_0 : i32, i32
  }
  func.func @transform_2(%arg0: i32) -> (i32, i32) {
    %c0_i32 = arith.constant 0 : i32
    %c0_i32_0 = arith.constant 0 : i32
    return %arg0, %c0_i32 : i32, i32
  }
}

</mosaic_0001>

<bundles_post_ra>
// kernel: tpu_custom_call.1
= control target key start
LH: loop header
LB: loop body
LE: loop exit
PB: predicated region body
PF: predicated region fallthrough
CT: control target
= control target key end

     0   :  { %v747_v0 = vmov 0   ;;  %vm594_vm0 = vcmask 326656   ;;  %s1152_s0 = inlined_call_operand.vmem [shape: f32[384,1], index: 0, kind: input, shape index: {}]   ;;  %s1153_s1 = inlined_call_operand.vmem [shape: f32[1,40], index: 1, kind: input, shape index: {}]   ;;  %s1154_s2 = inlined_call_operand.vmem [shape: f32[384,40], index: 2, kind: output, shape index: {}]  }
   0x1   :  { %650 = vset.pattern.permute.xlu1 %v747_v0  ;;  %649 = vset.pattern.permute.xlu0 %v747_v0  ;;  %v13_v1 = vld [vmem:[%s1152_s0 + $0x10] sm:$0xff]  ;;  %v11_v2 = vld [vmem:[%s1152_s0] sm:$0xff]  ;;  %v14_v3 = vld [vmem:[%s1152_s0 + $0x18] sm:$0xff] }
   0x2   :  { %v61_v4 = vmul.f32 2.20794, %v13_v1  ;;  %v59_v5 = vmul.f32 2.20794, %v11_v2  ;;  %v12_v6 = vld [vmem:[%s1152_s0 + $0x8] sm:$0xff]  ;;  %v15_v10 = vld [vmem:[%s1152_s0 + $0x20] sm:$0xff] }
   0x3   :  { %v62_v7 = vmul.f32 2.20794, %v14_v3  ;;  %v60_v8 = vmul.f32 2.20794, %v12_v6  ;;  %v16_v9 = vld [vmem:[%s1152_s0 + $0x28] sm:$0xff]  ;;  %v18_v13 = vld [vmem:[%s1152_s0 + $0x38] sm:$0xff] }
   0x4   :  { %120 = vperm.xlu1 %650, %v61_v4   ;;  %110 = vperm.xlu0 %649, %v59_v5   ;;  %v64_v11 = vmul.f32 2.20794, %v16_v9  ;;  %v63_v12 = vmul.f32 2.20794, %v15_v10  ;;  %v17_v14 = vld [vmem:[%s1152_s0 + $0x30] sm:$0xff]  ;;  %v20_v17 = vld [vmem:[%s1152_s0 + $0x48] sm:$0xff] }
   0x5   :  { %v66_v15 = vmul.f32 2.20794, %v18_v13  ;;  %v65_v16 = vmul.f32 2.20794, %v17_v14  ;;  %v19_v18 = vld [vmem:[%s1152_s0 + $0x40] sm:$0xff]  ;;  %v22_v21 = vld [vmem:[%s1152_s0 + $0x58] sm:$0xff] }
   0x6   :  { %v68_v19 = vmul.f32 2.20794, %v20_v17  ;;  %v67_v20 = vmul.f32 2.20794, %v19_v18  ;;  %v21_v22 = vld [vmem:[%s1152_s0 + $0x50] sm:$0xff]  ;;  %v24_v25 = vld [vmem:[%s1152_s0 + $0x68] sm:$0xff] }
   0x7   :  { %v70_v23 = vmul.f32 2.20794, %v22_v21  ;;  %v69_v24 = vmul.f32 2.20794, %v21_v22  ;;  %v23_v26 = vld [vmem:[%s1152_s0 + $0x60] sm:$0xff]  ;;  %v26_v29 = vld [vmem:[%s1152_s0 + $0x78] sm:$0xff] }
   0x8   :  { %125 = vperm.xlu1 %650, %v62_v7   ;;  %115 = vperm.xlu0 %649, %v60_v8   ;;  %v72_v27 = vmul.f32 2.20794, %v24_v25  ;;  %v71_v28 = vmul.f32 2.20794, %v23_v26  ;;  %v25_v30 = vld [vmem:[%s1152_s0 + $0x70] sm:$0xff]  ;;  %v28_v33 = vld [vmem:[%s1152_s0 + $0x88] sm:$0xff] }
   0x9   :  { %v74_v31 = vmul.f32 2.20794, %v26_v29  ;;  %v73_v32 = vmul.f32 2.20794, %v25_v30  ;;  %v27_v34 = vld [vmem:[%s1152_s0 + $0x80] sm:$0xff]  ;;  %v30_v37 = vld [vmem:[%s1152_s0 + $0x98] sm:$0xff] }
   0xa   :  { %v76_v35 = vmul.f32 2.20794, %v28_v33  ;;  %v75_v36 = vmul.f32 2.20794, %v27_v34  ;;  %v29_v38 = vld [vmem:[%s1152_s0 + $0x90] sm:$0xff]  ;;  %v32_v41 = vld [vmem:[%s1152_s0 + $0xa8] sm:$0xff] }
   0xb   :  { %v78_v39 = vmul.f32 2.20794, %v30_v37  ;;  %v77_v40 = vmul.f32 2.20794, %v29_v38  ;;  %v31_v42 = vld [vmem:[%s1152_s0 + $0xa0] sm:$0xff]  ;;  %v34_v45 = vld [vmem:[%s1152_s0 + $0xb8] sm:$0xff] }
   0xc   :  { %135 = vperm.xlu1 %650, %v64_v11   ;;  %130 = vperm.xlu0 %649, %v63_v12   ;;  %v80_v43 = vmul.f32 2.20794, %v32_v41  ;;  %v79_v44 = vmul.f32 2.20794, %v31_v42  ;;  %v33_v46 = vld [vmem:[%s1152_s0 + $0xb0] sm:$0xff]  ;;  %v36_v49 = vld [vmem:[%s1152_s0 + $0xc8] sm:$0xff] }
   0xd   :  { %v82_v47 = vmul.f32 2.20794, %v34_v45  ;;  %v81_v48 = vmul.f32 2.20794, %v33_v46  ;;  %v35_v50 = vld [vmem:[%s1152_s0 + $0xc0] sm:$0xff]  ;;  %v38_v53 = vld [vmem:[%s1152_s0 + $0xd8] sm:$0xff] }
   0xe   :  { %v84_v51 = vmul.f32 2.20794, %v36_v49  ;;  %v83_v52 = vmul.f32 2.20794, %v35_v50  ;;  %v37_v54 = vld [vmem:[%s1152_s0 + $0xd0] sm:$0xff]  ;;  %v40_v57 = vld [vmem:[%s1152_s0 + $0xe8] sm:$0xff] }
   0xf   :  { %v86_v55 = vmul.f32 2.20794, %v38_v53  ;;  %v85_v56 = vmul.f32 2.20794, %v37_v54  ;;  %v39_v58 = vld [vmem:[%s1152_s0 + $0xe0] sm:$0xff]  ;;  %v42_v61 = vld [vmem:[%s1152_s0 + $0xf8] sm:$0xff] }
  0x10   :  { %145 = vperm.xlu1 %650, %v66_v15   ;;  %140 = vperm.xlu0 %649, %v65_v16   ;;  %v88_v59 = vmul.f32 2.20794, %v40_v57  ;;  %v87_v60 = vmul.f32 2.20794, %v39_v58  ;;  %v41_v62 = vld [vmem:[%s1152_s0 + $0xf0] sm:$0xff]  ;;  %v44_v1 = vld [vmem:[%s1152_s0 + $0x108] sm:$0xff] }
  0x11   :  { %v90_v63 = vmul.f32 2.20794, %v42_v61  ;;  %v89_v0 = vmul.f32 2.20794, %v41_v62  ;;  %v43_v2 = vld [vmem:[%s1152_s0 + $0x100] sm:$0xff]  ;;  %v46_v5 = vld [vmem:[%s1152_s0 + $0x118] sm:$0xff] }
  0x12   :  { %v92_v3 = vmul.f32 2.20794, %v44_v1  ;;  %v91_v4 = vmul.f32 2.20794, %v43_v2  ;;  %v45_v6 = vld [vmem:[%s1152_s0 + $0x110] sm:$0xff]  ;;  %v48_v9 = vld [vmem:[%s1152_s0 + $0x128] sm:$0xff] }
  0x13   :  { %v94_v7 = vmul.f32 2.20794, %v46_v5  ;;  %v93_v8 = vmul.f32 2.20794, %v45_v6  ;;  %v47_v10 = vld [vmem:[%s1152_s0 + $0x120] sm:$0xff]  ;;  %v50_v13 = vld [vmem:[%s1152_s0 + $0x138] sm:$0xff] }
  0x14   :  { %155 = vperm.xlu1 %650, %v68_v19   ;;  %150 = vperm.xlu0 %649, %v67_v20   ;;  %v96_v11 = vmul.f32 2.20794, %v48_v9  ;;  %v95_v12 = vmul.f32 2.20794, %v47_v10  ;;  %v49_v14 = vld [vmem:[%s1152_s0 + $0x130] sm:$0xff]  ;;  %v52_v17 = vld [vmem:[%s1152_s0 + $0x148] sm:$0xff] }
  0x15   :  { %v98_v15 = vmul.f32 2.20794, %v50_v13  ;;  %v97_v16 = vmul.f32 2.20794, %v49_v14  ;;  %v51_v18 = vld [vmem:[%s1152_s0 + $0x140] sm:$0xff]  ;;  %v54_v21 = vld [vmem:[%s1152_s0 + $0x158] sm:$0xff] }
  0x16   :  { %v100_v19 = vmul.f32 2.20794, %v52_v17  ;;  %v99_v20 = vmul.f32 2.20794, %v51_v18  ;;  %v53_v22 = vld [vmem:[%s1152_s0 + $0x150] sm:$0xff]  ;;  %v56_v25 = vld [vmem:[%s1152_s0 + $0x168] sm:$0xff] }
  0x17   :  { %v55_v26 = vld [vmem:[%s1152_s0 + $0x160] sm:$0xff]  ;;  %v58_v29 = vld [vmem:[%s1152_s0 + $0x178] sm:$0xff]  ;;  %v57_v30 = vld [vmem:[%s1152_s0 + $0x170] sm:$0xff] }
  0x18   :  { %165 = vperm.xlu1 %650, %v70_v23   ;;  %160 = vperm.xlu0 %649, %v69_v24   ;;  %v102_v23 = vmul.f32 2.20794, %v54_v21  ;;  %v101_v24 = vmul.f32 2.20794, %v53_v22  ;;  %v910_v33 = vld [vmem:[%s1153_s1] ss:$0 sm:$0xff] }
  0x1c   :  { %175 = vperm.xlu1 %650, %v72_v27   ;;  %170 = vperm.xlu0 %649, %v71_v28   ;;  %v104_v27 = vmul.f32 2.20794, %v56_v25  ;;  %v103_v28 = vmul.f32 2.20794, %v55_v26 }
  0x20   :  { %185 = vperm.xlu1 %650, %v74_v31   ;;  %180 = vperm.xlu0 %649, %v73_v32   ;;  %v106_v31 = vmul.f32 2.20794, %v58_v29  ;;  %v105_v32 = vmul.f32 2.20794, %v57_v30 }
  0x24   :  { %195 = vperm.xlu1 %650, %v76_v35   ;;  %190 = vperm.xlu0 %649, %v75_v36  }
  0x28   :  { %205 = vperm.xlu1 %650, %v78_v39   ;;  %200 = vperm.xlu0 %649, %v77_v40  }
  0x2c   :  { %215 = vperm.xlu1 %650, %v80_v43   ;;  %210 = vperm.xlu0 %649, %v79_v44  }
  0x30   :  { %225 = vperm.xlu1 %650, %v82_v47   ;;  %220 = vperm.xlu0 %649, %v81_v48  }
  0x34   :  { %235 = vperm.xlu1 %650, %v84_v51   ;;  %230 = vperm.xlu0 %649, %v83_v52  }
  0x38   :  { %245 = vperm.xlu1 %650, %v86_v55   ;;  %240 = vperm.xlu0 %649, %v85_v56  }
  0x3c   :  { %255 = vperm.xlu1 %650, %v88_v59   ;;  %250 = vperm.xlu0 %649, %v87_v60  }
  0x40   :  { %265 = vperm.xlu1 %650, %v90_v63   ;;  %260 = vperm.xlu0 %649, %v89_v0  }
  0x44   :  { %275 = vperm.xlu1 %650, %v92_v3   ;;  %270 = vperm.xlu0 %649, %v91_v4  }
  0x48   :  { %285 = vperm.xlu1 %650, %v94_v7   ;;  %280 = vperm.xlu0 %649, %v93_v8  }
  0x4c   :  { %295 = vperm.xlu1 %650, %v96_v11   ;;  %290 = vperm.xlu0 %649, %v95_v12  }
  0x50   :  { %305 = vperm.xlu1 %650, %v98_v15   ;;  %300 = vperm.xlu0 %649, %v97_v16  }
  0x54   :  { %315 = vperm.xlu1 %650, %v100_v19   ;;  %310 = vperm.xlu0 %649, %v99_v20  }
  0x58   :  { %325 = vperm.xlu1 %650, %v102_v23   ;;  %320 = vperm.xlu0 %649, %v101_v24  }
  0x5c   :  { %335 = vperm.xlu1 %650, %v104_v27   ;;  %330 = vperm.xlu0 %649, %v103_v28  }
  0x60   :  { %345 = vperm.xlu1 %650, %v106_v31   ;;  %340 = vperm.xlu0 %649, %v105_v32  }
  0x83   :  { %v121_v34 = vpop.permute.xlu1 %120  ;;  %v111_v35 = vpop.permute.xlu0 %110 }
  0x84   :  { %v356_v36 = vsub.f32 %v121_v34, %v910_v33  ;;  %v354_v37 = vsub.f32 %v111_v35, %v910_v33 }
  0x86   :  { %v404_v38 = vmul.f32 %v356_v36, %v356_v36  ;;  %v402_v39 = vmul.f32 %v354_v37, %v354_v37 }
  0x87   :  { %v126_v40 = vpop.permute.xlu1 %125  ;;  %v116_v41 = vpop.permute.xlu0 %115 }
  0x88   :  { %v452_v42 = vsub.f32 0.0, %v404_v38  ;;  %v450_v43 = vsub.f32 0.0, %v402_v39  ;;  %v357_v44 = vsub.f32 %v126_v40, %v910_v33  ;;  %v355_v45 = vsub.f32 %v116_v41, %v910_v33 }
  0x8a   :  { %v502_v46 = vmul.f32 1.442695, %v452_v42  ;;  %v498_v47 = vmul.f32 1.442695, %v450_v43  ;;  %v405_v48 = vmul.f32 %v357_v44, %v357_v44  ;;  %v403_v49 = vmul.f32 %v355_v45, %v355_v45 }
  0x8b   :  { %v136_v50 = vpop.permute.xlu1 %135  ;;  %v131_v51 = vpop.permute.xlu0 %130 }
  0x8c   :  { %651 = vpow2.f32 %v502_v46  ;;  %v453_v52 = vsub.f32 0.0, %v405_v48  ;;  %v451_v53 = vsub.f32 0.0, %v403_v49  ;;  %v359_v54 = vsub.f32 %v136_v50, %v910_v33 }
  0x8d   :  { %653 = vpow2.f32 %v498_v47  ;;  %v358_v55 = vsub.f32 %v131_v51, %v910_v33 }
  0x8e   :  { %v504_v56 = vmul.f32 1.442695, %v453_v52  ;;  %v500_v57 = vmul.f32 1.442695, %v451_v53  ;;  %v407_v58 = vmul.f32 %v359_v54, %v359_v54 }
  0x8f   :  { %v406_v59 = vmul.f32 %v358_v55, %v358_v55  ;;  %v146_v60 = vpop.permute.xlu1 %145  ;;  %v141_v61 = vpop.permute.xlu0 %140 }
  0x90   :  { %655 = vpow2.f32 %v504_v56  ;;  %v455_v62 = vsub.f32 0.0, %v407_v58  ;;  %v361_v63 = vsub.f32 %v146_v60, %v910_v33  ;;  %v360_v0 = vsub.f32 %v141_v61, %v910_v33 }
  0x91   :  { %657 = vpow2.f32 %v500_v57  ;;  %v454_v1 = vsub.f32 0.0, %v406_v59 }
  0x92   :  { %v508_v2 = vmul.f32 1.442695, %v455_v62  ;;  %v409_v3 = vmul.f32 %v361_v63, %v361_v63  ;;  %v408_v4 = vmul.f32 %v360_v0, %v360_v0 }
  0x93   :  { %v506_v5 = vmul.f32 1.442695, %v454_v1  ;;  %v156_v6 = vpop.permute.xlu1 %155  ;;  %v151_v7 = vpop.permute.xlu0 %150 }
  0x94   :  { %659 = vpow2.f32 %v508_v2  ;;  %v457_v8 = vsub.f32 0.0, %v409_v3  ;;  %v456_v9 = vsub.f32 0.0, %v408_v4  ;;  %v363_v10 = vsub.f32 %v156_v6, %v910_v33 }
  0x95   :  { %661 = vpow2.f32 %v506_v5  ;;  %v362_v11 = vsub.f32 %v151_v7, %v910_v33 }
  0x96   :  { %v652_v12 = vpop.eup %651  ;;  %v512_v13 = vmul.f32 1.442695, %v457_v8  ;;  %v510_v14 = vmul.f32 1.442695, %v456_v9  ;;  %v411_v15 = vmul.f32 %v363_v10, %v363_v10 }
  0x97   :  { %v654_v16 = vpop.eup %653  ;;  %597 = vst.msk [vmem:[%s1154_s2 + $0x10] sm:$0xff] %vm594_vm0, %v652_v12  ;;  %v410_v17 = vmul.f32 %v362_v11, %v362_v11  ;;  %v166_v18 = vpop.permute.xlu1 %165 }
  0x98   :  { %v161_v19 = vpop.permute.xlu0 %160  ;;  %595 = vst.msk [vmem:[%s1154_s2] sm:$0xff] %vm594_vm0, %v654_v16  ;;  %663 = vpow2.f32 %v512_v13  ;;  %v459_v20 = vsub.f32 0.0, %v411_v15  ;;  %v365_v21 = vsub.f32 %v166_v18, %v910_v33 }
  0x99   :  { %v364_v22 = vsub.f32 %v161_v19, %v910_v33  ;;  %665 = vpow2.f32 %v510_v14  ;;  %v458_v23 = vsub.f32 0.0, %v410_v17 }
  0x9a   :  { %v656_v24 = vpop.eup %655  ;;  %v516_v25 = vmul.f32 1.442695, %v459_v20  ;;  %v413_v26 = vmul.f32 %v365_v21, %v365_v21 }
  0x9b   :  { %v412_v27 = vmul.f32 %v364_v22, %v364_v22  ;;  %v658_v28 = vpop.eup %657  ;;  %598 = vst.msk [vmem:[%s1154_s2 + $0x18] sm:$0xff] %vm594_vm0, %v656_v24  ;;  %v514_v29 = vmul.f32 1.442695, %v458_v23  ;;  %v176_v30 = vpop.permute.xlu1 %175 }
  0x9c   :  { %v171_v31 = vpop.permute.xlu0 %170  ;;  %596 = vst.msk [vmem:[%s1154_s2 + $0x8] sm:$0xff] %vm594_vm0, %v658_v28  ;;  %667 = vpow2.f32 %v516_v25  ;;  %v461_v32 = vsub.f32 0.0, %v413_v26  ;;  %v367_v35 = vsub.f32 %v176_v30, %v910_v33 }
  0x9d   :  { %v460_v34 = vsub.f32 0.0, %v412_v27  ;;  %669 = vpow2.f32 %v514_v29  ;;  %v366_v36 = vsub.f32 %v171_v31, %v910_v33 }
  0x9e   :  { %v660_v37 = vpop.eup %659  ;;  %v520_v38 = vmul.f32 1.442695, %v461_v32  ;;  %v415_v40 = vmul.f32 %v367_v35, %v367_v35 }
  0x9f   :  { %v518_v39 = vmul.f32 1.442695, %v460_v34  ;;  %v662_v41 = vpop.eup %661  ;;  %600 = vst.msk [vmem:[%s1154_s2 + $0x28] sm:$0xff] %vm594_vm0, %v660_v37  ;;  %v414_v42 = vmul.f32 %v366_v36, %v366_v36  ;;  %v186_v43 = vpop.permute.xlu1 %185 }
  0xa0   :  { %v181_v44 = vpop.permute.xlu0 %180  ;;  %599 = vst.msk [vmem:[%s1154_s2 + $0x20] sm:$0xff] %vm594_vm0, %v662_v41  ;;  %671 = vpow2.f32 %v520_v38  ;;  %v463_v45 = vsub.f32 0.0, %v415_v40  ;;  %v369_v46 = vsub.f32 %v186_v43, %v910_v33 }
  0xa1   :  { %v368_v47 = vsub.f32 %v181_v44, %v910_v33  ;;  %673 = vpow2.f32 %v518_v39  ;;  %v462_v48 = vsub.f32 0.0, %v414_v42 }
  0xa2   :  { %v664_v49 = vpop.eup %663  ;;  %v524_v50 = vmul.f32 1.442695, %v463_v45  ;;  %v417_v51 = vmul.f32 %v369_v46, %v369_v46 }
  0xa3   :  { %v416_v52 = vmul.f32 %v368_v47, %v368_v47  ;;  %v666_v53 = vpop.eup %665  ;;  %602 = vst.msk [vmem:[%s1154_s2 + $0x38] sm:$0xff] %vm594_vm0, %v664_v49  ;;  %v522_v54 = vmul.f32 1.442695, %v462_v48  ;;  %v196_v55 = vpop.permute.xlu1 %195 }
  0xa4   :  { %v191_v56 = vpop.permute.xlu0 %190  ;;  %601 = vst.msk [vmem:[%s1154_s2 + $0x30] sm:$0xff] %vm594_vm0, %v666_v53  ;;  %675 = vpow2.f32 %v524_v50  ;;  %v465_v57 = vsub.f32 0.0, %v417_v51  ;;  %v371_v59 = vsub.f32 %v196_v55, %v910_v33 }
  0xa5   :  { %v464_v58 = vsub.f32 0.0, %v416_v52  ;;  %677 = vpow2.f32 %v522_v54  ;;  %v370_v60 = vsub.f32 %v191_v56, %v910_v33 }
  0xa6   :  { %v668_v61 = vpop.eup %667  ;;  %v528_v62 = vmul.f32 1.442695, %v465_v57  ;;  %v419_v0 = vmul.f32 %v371_v59, %v371_v59 }
  0xa7   :  { %v526_v63 = vmul.f32 1.442695, %v464_v58  ;;  %v670_v1 = vpop.eup %669  ;;  %604 = vst.msk [vmem:[%s1154_s2 + $0x48] sm:$0xff] %vm594_vm0, %v668_v61  ;;  %v418_v2 = vmul.f32 %v370_v60, %v370_v60  ;;  %v206_v3 = vpop.permute.xlu1 %205 }
  0xa8   :  { %v201_v4 = vpop.permute.xlu0 %200  ;;  %603 = vst.msk [vmem:[%s1154_s2 + $0x40] sm:$0xff] %vm594_vm0, %v670_v1  ;;  %679 = vpow2.f32 %v528_v62  ;;  %v467_v5 = vsub.f32 0.0, %v419_v0  ;;  %v373_v6 = vsub.f32 %v206_v3, %v910_v33 }
  0xa9   :  { %v372_v7 = vsub.f32 %v201_v4, %v910_v33  ;;  %681 = vpow2.f32 %v526_v63  ;;  %v466_v8 = vsub.f32 0.0, %v418_v2 }
  0xaa   :  { %v672_v9 = vpop.eup %671  ;;  %v532_v10 = vmul.f32 1.442695, %v467_v5  ;;  %v421_v11 = vmul.f32 %v373_v6, %v373_v6 }
  0xab   :  { %v420_v12 = vmul.f32 %v372_v7, %v372_v7  ;;  %v674_v13 = vpop.eup %673  ;;  %606 = vst.msk [vmem:[%s1154_s2 + $0x58] sm:$0xff] %vm594_vm0, %v672_v9  ;;  %v530_v14 = vmul.f32 1.442695, %v466_v8  ;;  %v216_v15 = vpop.permute.xlu1 %215 }
  0xac   :  { %v211_v16 = vpop.permute.xlu0 %210  ;;  %605 = vst.msk [vmem:[%s1154_s2 + $0x50] sm:$0xff] %vm594_vm0, %v674_v13  ;;  %683 = vpow2.f32 %v532_v10  ;;  %v469_v17 = vsub.f32 0.0, %v421_v11  ;;  %v375_v19 = vsub.f32 %v216_v15, %v910_v33 }
  0xad   :  { %v468_v18 = vsub.f32 0.0, %v420_v12  ;;  %685 = vpow2.f32 %v530_v14  ;;  %v374_v20 = vsub.f32 %v211_v16, %v910_v33 }
  0xae   :  { %v676_v21 = vpop.eup %675  ;;  %v536_v22 = vmul.f32 1.442695, %v469_v17  ;;  %v423_v24 = vmul.f32 %v375_v19, %v375_v19 }
  0xaf   :  { %v534_v23 = vmul.f32 1.442695, %v468_v18  ;;  %v678_v25 = vpop.eup %677  ;;  %608 = vst.msk [vmem:[%s1154_s2 + $0x68] sm:$0xff] %vm594_vm0, %v676_v21  ;;  %v422_v26 = vmul.f32 %v374_v20, %v374_v20  ;;  %v226_v27 = vpop.permute.xlu1 %225 }
  0xb0   :  { %v221_v28 = vpop.permute.xlu0 %220  ;;  %607 = vst.msk [vmem:[%s1154_s2 + $0x60] sm:$0xff] %vm594_vm0, %v678_v25  ;;  %687 = vpow2.f32 %v536_v22  ;;  %v471_v29 = vsub.f32 0.0, %v423_v24  ;;  %v377_v30 = vsub.f32 %v226_v27, %v910_v33 }
  0xb1   :  { %v376_v31 = vsub.f32 %v221_v28, %v910_v33  ;;  %689 = vpow2.f32 %v534_v23  ;;  %v470_v32 = vsub.f32 0.0, %v422_v26 }
  0xb2   :  { %v680_v34 = vpop.eup %679  ;;  %v540_v35 = vmul.f32 1.442695, %v471_v29  ;;  %v425_v36 = vmul.f32 %v377_v30, %v377_v30 }
  0xb3   :  { %v424_v37 = vmul.f32 %v376_v31, %v376_v31  ;;  %v682_v38 = vpop.eup %681  ;;  %610 = vst.msk [vmem:[%s1154_s2 + $0x78] sm:$0xff] %vm594_vm0, %v680_v34  ;;  %v538_v39 = vmul.f32 1.442695, %v470_v32  ;;  %v236_v40 = vpop.permute.xlu1 %235 }
  0xb4   :  { %v231_v41 = vpop.permute.xlu0 %230  ;;  %609 = vst.msk [vmem:[%s1154_s2 + $0x70] sm:$0xff] %vm594_vm0, %v682_v38  ;;  %691 = vpow2.f32 %v540_v35  ;;  %v473_v42 = vsub.f32 0.0, %v425_v36  ;;  %v379_v44 = vsub.f32 %v236_v40, %v910_v33 }
  0xb5   :  { %v472_v43 = vsub.f32 0.0, %v424_v37  ;;  %693 = vpow2.f32 %v538_v39  ;;  %v378_v45 = vsub.f32 %v231_v41, %v910_v33 }
  0xb6   :  { %v684_v46 = vpop.eup %683  ;;  %v544_v47 = vmul.f32 1.442695, %v473_v42  ;;  %v427_v49 = vmul.f32 %v379_v44, %v379_v44 }
  0xb7   :  { %v542_v48 = vmul.f32 1.442695, %v472_v43  ;;  %v686_v50 = vpop.eup %685  ;;  %612 = vst.msk [vmem:[%s1154_s2 + $0x88] sm:$0xff] %vm594_vm0, %v684_v46  ;;  %v426_v51 = vmul.f32 %v378_v45, %v378_v45  ;;  %v246_v52 = vpop.permute.xlu1 %245 }
  0xb8   :  { %v241_v53 = vpop.permute.xlu0 %240  ;;  %611 = vst.msk [vmem:[%s1154_s2 + $0x80] sm:$0xff] %vm594_vm0, %v686_v50  ;;  %695 = vpow2.f32 %v544_v47  ;;  %v475_v54 = vsub.f32 0.0, %v427_v49  ;;  %v381_v55 = vsub.f32 %v246_v52, %v910_v33 }
  0xb9   :  { %v380_v56 = vsub.f32 %v241_v53, %v910_v33  ;;  %697 = vpow2.f32 %v542_v48  ;;  %v474_v57 = vsub.f32 0.0, %v426_v51 }
  0xba   :  { %v688_v58 = vpop.eup %687  ;;  %v548_v59 = vmul.f32 1.442695, %v475_v54  ;;  %v429_v60 = vmul.f32 %v381_v55, %v381_v55 }
  0xbb   :  { %v428_v61 = vmul.f32 %v380_v56, %v380_v56  ;;  %v690_v62 = vpop.eup %689  ;;  %614 = vst.msk [vmem:[%s1154_s2 + $0x98] sm:$0xff] %vm594_vm0, %v688_v58  ;;  %v546_v63 = vmul.f32 1.442695, %v474_v57  ;;  %v256_v0 = vpop.permute.xlu1 %255 }
  0xbc   :  { %v251_v1 = vpop.permute.xlu0 %250  ;;  %613 = vst.msk [vmem:[%s1154_s2 + $0x90] sm:$0xff] %vm594_vm0, %v690_v62  ;;  %699 = vpow2.f32 %v548_v59  ;;  %v477_v2 = vsub.f32 0.0, %v429_v60  ;;  %v383_v4 = vsub.f32 %v256_v0, %v910_v33 }
  0xbd   :  { %v476_v3 = vsub.f32 0.0, %v428_v61  ;;  %701 = vpow2.f32 %v546_v63  ;;  %v382_v5 = vsub.f32 %v251_v1, %v910_v33 }
  0xbe   :  { %v692_v6 = vpop.eup %691  ;;  %v552_v7 = vmul.f32 1.442695, %v477_v2  ;;  %v431_v9 = vmul.f32 %v383_v4, %v383_v4 }
  0xbf   :  { %v550_v8 = vmul.f32 1.442695, %v476_v3  ;;  %v694_v10 = vpop.eup %693  ;;  %616 = vst.msk [vmem:[%s1154_s2 + $0xa8] sm:$0xff] %vm594_vm0, %v692_v6  ;;  %v430_v11 = vmul.f32 %v382_v5, %v382_v5  ;;  %v266_v12 = vpop.permute.xlu1 %265 }
  0xc0   :  { %v261_v13 = vpop.permute.xlu0 %260  ;;  %615 = vst.msk [vmem:[%s1154_s2 + $0xa0] sm:$0xff] %vm594_vm0, %v694_v10  ;;  %703 = vpow2.f32 %v552_v7  ;;  %v479_v14 = vsub.f32 0.0, %v431_v9  ;;  %v385_v15 = vsub.f32 %v266_v12, %v910_v33 }
  0xc1   :  { %v384_v16 = vsub.f32 %v261_v13, %v910_v33  ;;  %705 = vpow2.f32 %v550_v8  ;;  %v478_v17 = vsub.f32 0.0, %v430_v11 }
  0xc2   :  { %v696_v18 = vpop.eup %695  ;;  %v556_v19 = vmul.f32 1.442695, %v479_v14  ;;  %v433_v20 = vmul.f32 %v385_v15, %v385_v15 }
  0xc3   :  { %v432_v21 = vmul.f32 %v384_v16, %v384_v16  ;;  %v698_v22 = vpop.eup %697  ;;  %618 = vst.msk [vmem:[%s1154_s2 + $0xb8] sm:$0xff] %vm594_vm0, %v696_v18  ;;  %v554_v23 = vmul.f32 1.442695, %v478_v17  ;;  %v276_v24 = vpop.permute.xlu1 %275 }
  0xc4   :  { %v271_v25 = vpop.permute.xlu0 %270  ;;  %617 = vst.msk [vmem:[%s1154_s2 + $0xb0] sm:$0xff] %vm594_vm0, %v698_v22  ;;  %707 = vpow2.f32 %v556_v19  ;;  %v481_v26 = vsub.f32 0.0, %v433_v20  ;;  %v387_v28 = vsub.f32 %v276_v24, %v910_v33 }
  0xc5   :  { %v480_v27 = vsub.f32 0.0, %v432_v21  ;;  %709 = vpow2.f32 %v554_v23  ;;  %v386_v29 = vsub.f32 %v271_v25, %v910_v33 }
  0xc6   :  { %v700_v30 = vpop.eup %699  ;;  %v560_v31 = vmul.f32 1.442695, %v481_v26  ;;  %v435_v34 = vmul.f32 %v387_v28, %v387_v28 }
  0xc7   :  { %v558_v32 = vmul.f32 1.442695, %v480_v27  ;;  %v702_v35 = vpop.eup %701  ;;  %620 = vst.msk [vmem:[%s1154_s2 + $0xc8] sm:$0xff] %vm594_vm0, %v700_v30  ;;  %v434_v36 = vmul.f32 %v386_v29, %v386_v29  ;;  %v286_v37 = vpop.permute.xlu1 %285 }
  0xc8   :  { %v281_v38 = vpop.permute.xlu0 %280  ;;  %619 = vst.msk [vmem:[%s1154_s2 + $0xc0] sm:$0xff] %vm594_vm0, %v702_v35  ;;  %711 = vpow2.f32 %v560_v31  ;;  %v483_v39 = vsub.f32 0.0, %v435_v34  ;;  %v389_v40 = vsub.f32 %v286_v37, %v910_v33 }
  0xc9   :  { %v388_v41 = vsub.f32 %v281_v38, %v910_v33  ;;  %713 = vpow2.f32 %v558_v32  ;;  %v482_v42 = vsub.f32 0.0, %v434_v36 }
  0xca   :  { %v704_v43 = vpop.eup %703  ;;  %v564_v44 = vmul.f32 1.442695, %v483_v39  ;;  %v437_v45 = vmul.f32 %v389_v40, %v389_v40 }
  0xcb   :  { %v436_v46 = vmul.f32 %v388_v41, %v388_v41  ;;  %v706_v47 = vpop.eup %705  ;;  %622 = vst.msk [vmem:[%s1154_s2 + $0xd8] sm:$0xff] %vm594_vm0, %v704_v43  ;;  %v562_v48 = vmul.f32 1.442695, %v482_v42  ;;  %v296_v49 = vpop.permute.xlu1 %295 }
  0xcc   :  { %v291_v50 = vpop.permute.xlu0 %290  ;;  %621 = vst.msk [vmem:[%s1154_s2 + $0xd0] sm:$0xff] %vm594_vm0, %v706_v47  ;;  %715 = vpow2.f32 %v564_v44  ;;  %v485_v51 = vsub.f32 0.0, %v437_v45  ;;  %v391_v53 = vsub.f32 %v296_v49, %v910_v33 }
  0xcd   :  { %v484_v52 = vsub.f32 0.0, %v436_v46  ;;  %717 = vpow2.f32 %v562_v48  ;;  %v390_v54 = vsub.f32 %v291_v50, %v910_v33 }
  0xce   :  { %v708_v55 = vpop.eup %707  ;;  %v568_v56 = vmul.f32 1.442695, %v485_v51  ;;  %v439_v58 = vmul.f32 %v391_v53, %v391_v53 }
  0xcf   :  { %v566_v57 = vmul.f32 1.442695, %v484_v52  ;;  %v710_v59 = vpop.eup %709  ;;  %624 = vst.msk [vmem:[%s1154_s2 + $0xe8] sm:$0xff] %vm594_vm0, %v708_v55  ;;  %v438_v60 = vmul.f32 %v390_v54, %v390_v54  ;;  %v306_v61 = vpop.permute.xlu1 %305 }
  0xd0   :  { %v301_v62 = vpop.permute.xlu0 %300  ;;  %623 = vst.msk [vmem:[%s1154_s2 + $0xe0] sm:$0xff] %vm594_vm0, %v710_v59  ;;  %719 = vpow2.f32 %v568_v56  ;;  %v487_v63 = vsub.f32 0.0, %v439_v58  ;;  %v393_v0 = vsub.f32 %v306_v61, %v910_v33 }
  0xd1   :  { %v392_v1 = vsub.f32 %v301_v62, %v910_v33  ;;  %721 = vpow2.f32 %v566_v57  ;;  %v486_v2 = vsub.f32 0.0, %v438_v60 }
  0xd2   :  { %v712_v3 = vpop.eup %711  ;;  %v572_v4 = vmul.f32 1.442695, %v487_v63  ;;  %v441_v5 = vmul.f32 %v393_v0, %v393_v0 }
  0xd3   :  { %v440_v6 = vmul.f32 %v392_v1, %v392_v1  ;;  %v714_v7 = vpop.eup %713  ;;  %626 = vst.msk [vmem:[%s1154_s2 + $0xf8] sm:$0xff] %vm594_vm0, %v712_v3  ;;  %v570_v8 = vmul.f32 1.442695, %v486_v2  ;;  %v316_v9 = vpop.permute.xlu1 %315 }
  0xd4   :  { %v311_v10 = vpop.permute.xlu0 %310  ;;  %625 = vst.msk [vmem:[%s1154_s2 + $0xf0] sm:$0xff] %vm594_vm0, %v714_v7  ;;  %723 = vpow2.f32 %v572_v4  ;;  %v489_v11 = vsub.f32 0.0, %v441_v5  ;;  %v395_v13 = vsub.f32 %v316_v9, %v910_v33 }
  0xd5   :  { %v488_v12 = vsub.f32 0.0, %v440_v6  ;;  %725 = vpow2.f32 %v570_v8  ;;  %v394_v14 = vsub.f32 %v311_v10, %v910_v33 }
  0xd6   :  { %v716_v15 = vpop.eup %715  ;;  %v576_v16 = vmul.f32 1.442695, %v489_v11  ;;  %v443_v18 = vmul.f32 %v395_v13, %v395_v13 }
  0xd7   :  { %v574_v17 = vmul.f32 1.442695, %v488_v12  ;;  %v718_v19 = vpop.eup %717  ;;  %628 = vst.msk [vmem:[%s1154_s2 + $0x108] sm:$0xff] %vm594_vm0, %v716_v15  ;;  %v442_v20 = vmul.f32 %v394_v14, %v394_v14  ;;  %v326_v21 = vpop.permute.xlu1 %325 }
  0xd8   :  { %v321_v22 = vpop.permute.xlu0 %320  ;;  %627 = vst.msk [vmem:[%s1154_s2 + $0x100] sm:$0xff] %vm594_vm0, %v718_v19  ;;  %727 = vpow2.f32 %v576_v16  ;;  %v491_v23 = vsub.f32 0.0, %v443_v18  ;;  %v397_v24 = vsub.f32 %v326_v21, %v910_v33 }
  0xd9   :  { %v396_v25 = vsub.f32 %v321_v22, %v910_v33  ;;  %729 = vpow2.f32 %v574_v17  ;;  %v490_v26 = vsub.f32 0.0, %v442_v20 }
  0xda   :  { %v720_v27 = vpop.eup %719  ;;  %v580_v28 = vmul.f32 1.442695, %v491_v23  ;;  %v445_v29 = vmul.f32 %v397_v24, %v397_v24 }
  0xdb   :  { %v444_v30 = vmul.f32 %v396_v25, %v396_v25  ;;  %v722_v31 = vpop.eup %721  ;;  %630 = vst.msk [vmem:[%s1154_s2 + $0x118] sm:$0xff] %vm594_vm0, %v720_v27  ;;  %v578_v32 = vmul.f32 1.442695, %v490_v26  ;;  %v336_v34 = vpop.permute.xlu1 %335 }
  0xdc   :  { %v331_v35 = vpop.permute.xlu0 %330  ;;  %629 = vst.msk [vmem:[%s1154_s2 + $0x110] sm:$0xff] %vm594_vm0, %v722_v31  ;;  %731 = vpow2.f32 %v580_v28  ;;  %v493_v36 = vsub.f32 0.0, %v445_v29  ;;  %v399_v38 = vsub.f32 %v336_v34, %v910_v33 }
  0xdd   :  { %v492_v37 = vsub.f32 0.0, %v444_v30  ;;  %733 = vpow2.f32 %v578_v32  ;;  %v398_v39 = vsub.f32 %v331_v35, %v910_v33 }
  0xde   :  { %v724_v40 = vpop.eup %723  ;;  %v584_v41 = vmul.f32 1.442695, %v493_v36  ;;  %v447_v43 = vmul.f32 %v399_v38, %v399_v38 }
  0xdf   :  { %v582_v42 = vmul.f32 1.442695, %v492_v37  ;;  %v726_v44 = vpop.eup %725  ;;  %632 = vst.msk [vmem:[%s1154_s2 + $0x128] sm:$0xff] %vm594_vm0, %v724_v40  ;;  %v446_v45 = vmul.f32 %v398_v39, %v398_v39  ;;  %v346_v46 = vpop.permute.xlu1 %345 }
  0xe0   :  { %v341_v47 = vpop.permute.xlu0 %340  ;;  %631 = vst.msk [vmem:[%s1154_s2 + $0x120] sm:$0xff] %vm594_vm0, %v726_v44  ;;  %735 = vpow2.f32 %v584_v41  ;;  %v495_v48 = vsub.f32 0.0, %v447_v43  ;;  %v401_v49 = vsub.f32 %v346_v46, %v910_v33 }
  0xe1   :  { %v400_v50 = vsub.f32 %v341_v47, %v910_v33  ;;  %737 = vpow2.f32 %v582_v42  ;;  %v494_v51 = vsub.f32 0.0, %v446_v45 }
  0xe2   :  { %v728_v52 = vpop.eup %727  ;;  %v588_v53 = vmul.f32 1.442695, %v495_v48  ;;  %v449_v54 = vmul.f32 %v401_v49, %v401_v49 }
  0xe3   :  { %v448_v55 = vmul.f32 %v400_v50, %v400_v50  ;;  %v730_v56 = vpop.eup %729  ;;  %634 = vst.msk [vmem:[%s1154_s2 + $0x138] sm:$0xff] %vm594_vm0, %v728_v52  ;;  %v586_v57 = vmul.f32 1.442695, %v494_v51 }
  0xe4   :  { %633 = vst.msk [vmem:[%s1154_s2 + $0x130] sm:$0xff] %vm594_vm0, %v730_v56  ;;  %739 = vpow2.f32 %v588_v53  ;;  %v497_v33 = vsub.f32 0.0, %v449_v54 }
  0xe5   :  { %v496_v58 = vsub.f32 0.0, %v448_v55  ;;  %741 = vpow2.f32 %v586_v57 }
  0xe6   :  { %v732_v59 = vpop.eup %731  ;;  %v592_v60 = vmul.f32 1.442695, %v497_v33 }
  0xe7   :  { %v590_v61 = vmul.f32 1.442695, %v496_v58  ;;  %v734_v62 = vpop.eup %733  ;;  %636 = vst.msk [vmem:[%s1154_s2 + $0x148] sm:$0xff] %vm594_vm0, %v732_v59 }
  0xe8   :  { %635 = vst.msk [vmem:[%s1154_s2 + $0x140] sm:$0xff] %vm594_vm0, %v734_v62  ;;  %743 = vpow2.f32 %v592_v60 }
  0xe9   :  { %745 = vpow2.f32 %v590_v61 }
  0xea   :  { %v736_v63 = vpop.eup %735 }
  0xeb   :  { %v738_v0 = vpop.eup %737  ;;  %638 = vst.msk [vmem:[%s1154_s2 + $0x158] sm:$0xff] %vm594_vm0, %v736_v63 }
  0xec   :  { %637 = vst.msk [vmem:[%s1154_s2 + $0x150] sm:$0xff] %vm594_vm0, %v738_v0 }
  0xee   :  { %v740_v1 = vpop.eup %739 }
  0xef   :  { %v742_v2 = vpop.eup %741  ;;  %640 = vst.msk [vmem:[%s1154_s2 + $0x168] sm:$0xff] %vm594_vm0, %v740_v1 }
  0xf0   :  { %639 = vst.msk [vmem:[%s1154_s2 + $0x160] sm:$0xff] %vm594_vm0, %v742_v2 }
  0xf2   :  { %v744_v3 = vpop.eup %743 }
  0xf3   :  { %v746_v4 = vpop.eup %745  ;;  %642 = vst.msk [vmem:[%s1154_s2 + $0x178] sm:$0xff] %vm594_vm0, %v744_v3 }
  0xf4   :  { %641 = vst.msk [vmem:[%s1154_s2 + $0x170] sm:$0xff] %vm594_vm0, %v746_v4 }

</bundles_post_ra>
